<compile_context>
chip_gen: v7x
topology: tpu7x:2x2x1
jax: 0.10.0
libtpu: 0.0.40
codegen_flags: <defaults>
</compile_context>

<pallas_src>
import jax
import jax.numpy as jnp
from jax.experimental import pallas as pl
from jax.experimental.pallas import tpu as pltpu


def mlp_agg_kernel(xb_ref, xt_ref, w1t_ref, b1t_ref, w2t_ref, b2t_ref,
                   w3t_ref, b3t_ref, out_ref, acc_ref):
    n = pl.program_id(0)                      # node-tile index (reduction)
    d_aug, b_pad = acc_ref.shape              # node_dim + 1, padded num_graphs
    tn = xt_ref.shape[1]                      # node tile

    # ---- init transposed accumulator at the start of the node reduction ----
    @pl.when(n == 0)
    def _():
        acc_ref[...] = jnp.zeros_like(acc_ref)

    # ---- scatter-sum, graph axis on lanes:
    #      acc[d_aug, B] += x_tile[d_aug, TN] @ onehot[TN, B]
    #      counts ride along in the ones row of x, so one lane-dense MXU op
    #      produces both per-graph sums and per-graph counts. ----
    graph_ids = jax.lax.broadcasted_iota(jnp.int32, (tn, b_pad), 1)
    onehot = (graph_ids == xb_ref[...]).astype(jnp.float32)       # (TN, B)
    acc_ref[...] += jnp.dot(xt_ref[...], onehot,
                            preferred_element_type=jnp.float32)   # (d_aug, B)

    # ---- finalize: mean + transposed Lin->ReLU->Lin->ReLU->Lin, once ----
    @pl.when(n == pl.num_programs(0) - 1)
    def _():
        acc = acc_ref[...]
        counts = jnp.maximum(acc[d_aug - 1:d_aug, :], 1.0)        # (1, B)
        mean_t = acc / counts    # counts row is killed by the zero w1^T column
        h1 = jnp.maximum(
            jnp.dot(w1t_ref[...], mean_t, preferred_element_type=jnp.float32)
            + b1t_ref[...], 0.0)                                  # (H, B)
        h2 = jnp.maximum(
            jnp.dot(w2t_ref[...], h1, preferred_element_type=jnp.float32)
            + b2t_ref[...], 0.0)                                  # (H, B)
        out = (jnp.dot(w3t_ref[...], h2, preferred_element_type=jnp.float32)
               + b3t_ref[...])                                    # (O, B)
        out_ref[...] = out.astype(out_ref.dtype)


def mlp_agg_forward(x, x_batch, params, num_graphs, *, node_tile=None):
    """x: [N, node_dim] f32, x_batch: [N] int32 graph ids in [0, num_graphs)."""
    w1, b1, w2, b2, w3, b3 = params
    N, node_dim = x.shape
    hid_dim = w1.shape[1]
    out_dim = w3.shape[1]
    d_aug = node_dim + 1

    # Node tile is the lane dim of x^T / sublane dim of the one-hot: multiple
    # of 128. Large default to amortize per-grid-step overhead.
    if node_tile is None:
        node_tile = min(2048, pl.cdiv(N, 128) * 128)
    n_pad = pl.cdiv(N, node_tile) * node_tile
    num_node_tiles = n_pad // node_tile
    # Graphs sit on the lane axis of the accumulator / MLP / output: pad to 128.
    b_pad = pl.cdiv(num_graphs, 128) * 128

    # --- host-side layout prep (cheap, O(N*D)) ---
    # x transposed + ones row: one matmul yields per-graph sums AND counts.
    x_t = jnp.concatenate(
        [x.astype(jnp.float32).T, jnp.ones((1, N), jnp.float32)], axis=0)
    x_t = jnp.pad(x_t, ((0, 0), (0, n_pad - N)))                 # (d_aug, n_pad)
    # Batch ids as a column, padded with -1 so padded nodes match no graph.
    xb = jnp.pad(x_batch.astype(jnp.int32), (0, n_pad - N),
                 constant_values=-1).reshape(n_pad, 1)
    # Transposed weights; extra zero column of w1^T kills the counts row.
    w1t = jnp.concatenate(
        [w1.astype(jnp.float32).T, jnp.zeros((hid_dim, 1), jnp.float32)],
        axis=1)                                                  # (H, d_aug)
    b1t = b1.astype(jnp.float32).reshape(hid_dim, 1)
    w2t = w2.astype(jnp.float32).T
    b2t = b2.astype(jnp.float32).reshape(hid_dim, 1)
    w3t = w3.astype(jnp.float32).T
    b3t = b3.astype(jnp.float32).reshape(out_dim, 1)

    grid = (num_node_tiles,)
    const = lambda n: (0, 0)   # weights / biases: DMA'd once, block-constant
    in_specs = [
        pl.BlockSpec((node_tile, 1), lambda n: (n, 0)),          # batch ids
        pl.BlockSpec((d_aug, node_tile), lambda n: (0, n)),      # x^T (+ ones)
        pl.BlockSpec((hid_dim, d_aug), const),                   # w1^T (+0 col)
        pl.BlockSpec((hid_dim, 1), const),                       # b1^T
        pl.BlockSpec((hid_dim, hid_dim), const),                 # w2^T
        pl.BlockSpec((hid_dim, 1), const),                       # b2^T
        pl.BlockSpec((out_dim, hid_dim), const),                 # w3^T
        pl.BlockSpec((out_dim, 1), const),                       # b3^T
    ]
    out_spec = pl.BlockSpec((out_dim, b_pad), lambda n: (0, 0))

    mlp_flops = 2 * b_pad * (d_aug * hid_dim + hid_dim * hid_dim
                             + hid_dim * out_dim)
    cost = pl.CostEstimate(
        flops=2 * n_pad * d_aug * b_pad + mlp_flops,
        transcendentals=0,
        bytes_accessed=4 * (n_pad * d_aug + n_pad
                            + hid_dim * d_aug + hid_dim * hid_dim
                            + out_dim * hid_dim + 2 * hid_dim + out_dim
                            + out_dim * b_pad),
    )

    out_t = pl.pallas_call(
        mlp_agg_kernel,
        out_shape=jax.ShapeDtypeStruct((out_dim, b_pad), jnp.float32),
        grid=grid,
        in_specs=in_specs,
        out_specs=out_spec,
        scratch_shapes=[pltpu.VMEM((d_aug, b_pad), jnp.float32)],
        compiler_params=pltpu.CompilerParams(
            dimension_semantics=("arbitrary",)),
        cost_estimate=cost,
    )(xb, x_t, w1t, b1t, w2t, b2t, w3t, b3t)

    # back to the PyTorch layout: [num_graphs, out_dim]
    return out_t.T[:num_graphs]


def init_params(key, node_dim, hid_dim, out_dim):
    ks = jax.random.split(key, 6)

    def lin(kw, kb, fan_in, fan_out):
        bound = 1.0 / jnp.sqrt(fan_in)
        w = jax.random.uniform(kw, (fan_in, fan_out), jnp.float32, -bound, bound)
        b = jax.random.uniform(kb, (1, fan_out), jnp.float32, -bound, bound)
        return w, b

    w1, b1 = lin(ks[0], ks[1], node_dim, hid_dim)
    w2, b2 = lin(ks[2], ks[3], hid_dim, hid_dim)
    w3, b3 = lin(ks[4], ks[5], hid_dim, out_dim)
    return (w1, b1, w2, b2, w3, b3)


def reference_forward(x, x_batch, params, num_graphs):
    w1, b1, w2, b2, w3, b3 = params
    onehot = (x_batch[None, :] == jnp.arange(num_graphs)[:, None]
              ).astype(jnp.float32)
    sums = onehot @ x
    counts = jnp.maximum(onehot.sum(axis=1, keepdims=True), 1.0)
    x_agg = sums / counts
    h1 = jnp.maximum(x_agg @ w1 + b1, 0.0)
    h2 = jnp.maximum(h1 @ w2 + b2, 0.0)
    return h2 @ w3 + b3


if __name__ == "__main__":
    node_dim, hid_dim, out_dim = 8, 32, 4
    num_graphs, nodes_per_graph = 8, 8
    num_nodes = num_graphs * nodes_per_graph

    key = jax.random.PRNGKey(0)
    kx, kp = jax.random.split(key)
    x = jax.random.normal(kx, (num_nodes, node_dim), jnp.float32)
    # nodes grouped by graph id (sorted, as PyG batches are)
    x_batch = jnp.repeat(jnp.arange(num_graphs, dtype=jnp.int32),
                         nodes_per_graph)

    params = init_params(kp, node_dim, hid_dim, out_dim)

    out = mlp_agg_forward(x, x_batch, params, num_graphs)
    out = jax.block_until_ready(out)

    ref = reference_forward(x, x_batch, params, num_graphs)
    assert out.shape == (num_graphs, out_dim)
    assert jnp.allclose(out, ref, atol=1e-5, rtol=1e-5)

    print("KERNEL_OK")
</pallas_src>

<mosaic_0001>
module attributes {stable_mosaic.version = 11 : i64} {
  func.func @mlp_agg_kernel(%arg0: i32, %arg1: memref<128x1xi32, #tpu.memory_space<vmem>>, %arg2: memref<9x128xf32, #tpu.memory_space<vmem>>, %arg3: memref<32x9xf32, #tpu.memory_space<vmem>>, %arg4: memref<32x1xf32, #tpu.memory_space<vmem>>, %arg5: memref<32x32xf32, #tpu.memory_space<vmem>>, %arg6: memref<32x1xf32, #tpu.memory_space<vmem>>, %arg7: memref<4x32xf32, #tpu.memory_space<vmem>>, %arg8: memref<4x1xf32, #tpu.memory_space<vmem>>, %arg9: memref<4x128xf32, #tpu.memory_space<vmem>>, %arg10: memref<9x128xf32, #tpu.memory_space<vmem>>) attributes {dimension_semantics = [#tpu.dimension_semantics<arbitrary>], iteration_bounds = array<i64: 1>, scalar_prefetch = 0 : i64, scratch_operands = 1 : i64, tpu.core_type = #tpu.core_type<tc>, window_params = [{transform_indices = @transform_0, window_bounds = array<i64: 128, 1>}, {transform_indices = @transform_1, window_bounds = array<i64: 9, 128>}, {pipeline_mode = #tpu.pipeline_mode<synchronous>, transform_indices = @transform_2, window_bounds = array<i64: 32, 9>}, {pipeline_mode = #tpu.pipeline_mode<synchronous>, transform_indices = @transform_3, window_bounds = array<i64: 32, 1>}, {pipeline_mode = #tpu.pipeline_mode<synchronous>, transform_indices = @transform_4, window_bounds = array<i64: 32, 32>}, {pipeline_mode = #tpu.pipeline_mode<synchronous>, transform_indices = @transform_5, window_bounds = array<i64: 32, 1>}, {pipeline_mode = #tpu.pipeline_mode<synchronous>, transform_indices = @transform_6, window_bounds = array<i64: 4, 32>}, {pipeline_mode = #tpu.pipeline_mode<synchronous>, transform_indices = @transform_7, window_bounds = array<i64: 4, 1>}, {pipeline_mode = #tpu.pipeline_mode<synchronous>, transform_indices = @transform_8, window_bounds = array<i64: 4, 128>}]} {
    %c0_i32 = arith.constant 0 : i32
    %0 = arith.cmpi eq, %arg0, %c0_i32 : i32
    %1 = arith.extui %0 : i1 to i32
    %c0_i32_0 = arith.constant 0 : i32
    %2 = arith.cmpi ne, %1, %c0_i32_0 : i32
    scf.if %2 {
      %cst_10 = arith.constant 0.000000e+00 : f32
      %17 = vector.broadcast %cst_10 : f32 to vector<9x128xf32>
      %c0_11 = arith.constant 0 : index
      %c0_12 = arith.constant 0 : index
      %18 = vector.load %arg10[%c0_11, %c0_12] : memref<9x128xf32, #tpu.memory_space<vmem>>, vector<9x128xf32>
      tpu.vector_store %arg10[%c0_11, %c0_12], %17 {strides = array<i32>} : memref<9x128xf32, #tpu.memory_space<vmem>>, vector<9x128xf32>,
    } else {
    }
    %3 = tpu.iota {dimensions = array<i32: 1>} : vector<128x128xi32>
    %c0 = arith.constant 0 : index
    %c0_1 = arith.constant 0 : index
    %4 = vector.load %arg1[%c0, %c0_1] : memref<128x1xi32, #tpu.memory_space<vmem>>, vector<128x1xi32>
    %5 = vector.broadcast %4 : vector<128x1xi32> to vector<128x128xi32>
    %6 = arith.cmpi eq, %3, %5 : vector<128x128xi32>
    %7 = arith.extui %6 : vector<128x128xi1> to vector<128x128xi32>
    %8 = arith.sitofp %7 : vector<128x128xi32> to vector<128x128xf32>
    %c0_2 = arith.constant 0 : index
    %c0_3 = arith.constant 0 : index
    %9 = vector.load %arg10[%c0_2, %c0_3] : memref<9x128xf32, #tpu.memory_space<vmem>>, vector<9x128xf32>
    %c0_4 = arith.constant 0 : index
    %c0_5 = arith.constant 0 : index
    %10 = vector.load %arg2[%c0_4, %c0_5] : memref<9x128xf32, #tpu.memory_space<vmem>>, vector<9x128xf32>
    %cst = arith.constant dense<0.000000e+00> : vector<9x128xf32>
    %11 = tpu.matmul %10, %8, %cst {dimension_numbers = #tpu.dot_dimension_numbers<[1], [0], [0], [1], [0, 0, 1, 1], [], []>} : vector<9x128xf32>, vector<128x128xf32>, vector<9x128xf32> -> vector<9x128xf32>
    %12 = arith.addf %9, %11 : vector<9x128xf32>
    %c0_6 = arith.constant 0 : index
    %c0_7 = arith.constant 0 : index
    %13 = vector.load %arg10[%c0_6, %c0_7] : memref<9x128xf32, #tpu.memory_space<vmem>>, vector<9x128xf32>
    tpu.vector_store %arg10[%c0_6, %c0_7], %12 {strides = array<i32>} : memref<9x128xf32, #tpu.memory_space<vmem>>, vector<9x128xf32>,
    %c0_i32_8 = arith.constant 0 : i32
    %14 = arith.cmpi eq, %arg0, %c0_i32_8 : i32
    %15 = arith.extui %14 : i1 to i32
    %c0_i32_9 = arith.constant 0 : i32
    %16 = arith.cmpi ne, %15, %c0_i32_9 : i32
    scf.if %16 {
      %c0_10 = arith.constant 0 : index
      %c0_11 = arith.constant 0 : index
      %17 = vector.load %arg10[%c0_10, %c0_11] : memref<9x128xf32, #tpu.memory_space<vmem>>, vector<9x128xf32>
      %18 = vector.extract_strided_slice %17 {offsets = [8, 0], sizes = [1, 128], strides = [1, 1]} : vector<9x128xf32> to vector<1x128xf32>
      %cst_12 = arith.constant 1.000000e+00 : f32
      %19 = vector.broadcast %cst_12 : f32 to vector<1x128xf32>
      %20 = arith.maximumf %18, %19 : vector<1x128xf32>
      %21 = vector.broadcast %20 : vector<1x128xf32> to vector<9x128xf32>
      %22 = arith.divf %17, %21 : vector<9x128xf32>
      %c0_13 = arith.constant 0 : index
      %c0_14 = arith.constant 0 : index
      %23 = vector.load %arg3[%c0_13, %c0_14] : memref<32x9xf32, #tpu.memory_space<vmem>>, vector<32x9xf32>
      %cst_15 = arith.constant dense<0.000000e+00> : vector<32x128xf32>
      %24 = tpu.matmul %23, %22, %cst_15 {dimension_numbers = #tpu.dot_dimension_numbers<[1], [0], [0], [1], [0, 0, 1, 1], [], []>} : vector<32x9xf32>, vector<9x128xf32>, vector<32x128xf32> -> vector<32x128xf32>
      %c0_16 = arith.constant 0 : index
      %c0_17 = arith.constant 0 : index
      %25 = vector.load %arg4[%c0_16, %c0_17] : memref<32x1xf32, #tpu.memory_space<vmem>>, vector<32x1xf32>
      %26 = vector.broadcast %25 : vector<32x1xf32> to vector<32x128xf32>
      %27 = arith.addf %24, %26 : vector<32x128xf32>
      %cst_18 = arith.constant 0.000000e+00 : f32
      %28 = vector.broadcast %cst_18 : f32 to vector<32x128xf32>
      %29 = arith.maximumf %27, %28 : vector<32x128xf32>
      %c0_19 = arith.constant 0 : index
      %c0_20 = arith.constant 0 : index
      %30 = vector.load %arg5[%c0_19, %c0_20] : memref<32x32xf32, #tpu.memory_space<vmem>>, vector<32x32xf32>
      %cst_21 = arith.constant dense<0.000000e+00> : vector<32x128xf32>
      %31 = tpu.matmul %30, %29, %cst_21 {dimension_numbers = #tpu.dot_dimension_numbers<[1], [0], [0], [1], [0, 0, 1, 1], [], []>} : vector<32x32xf32>, vector<32x128xf32>, vector<32x128xf32> -> vector<32x128xf32>
      %c0_22 = arith.constant 0 : index
      %c0_23 = arith.constant 0 : index
      %32 = vector.load %arg6[%c0_22, %c0_23] : memref<32x1xf32, #tpu.memory_space<vmem>>, vector<32x1xf32>
      %33 = vector.broadcast %32 : vector<32x1xf32> to vector<32x128xf32>
      %34 = arith.addf %31, %33 : vector<32x128xf32>
      %cst_24 = arith.constant 0.000000e+00 : f32
      %35 = vector.broadcast %cst_24 : f32 to vector<32x128xf32>
      %36 = arith.maximumf %34, %35 : vector<32x128xf32>
      %c0_25 = arith.constant 0 : index
      %c0_26 = arith.constant 0 : index
      %37 = vector.load %arg7[%c0_25, %c0_26] : memref<4x32xf32, #tpu.memory_space<vmem>>, vector<4x32xf32>
      %cst_27 = arith.constant dense<0.000000e+00> : vector<4x128xf32>
      %38 = tpu.matmul %37, %36, %cst_27 {dimension_numbers = #tpu.dot_dimension_numbers<[1], [0], [0], [1], [0, 0, 1, 1], [], []>} : vector<4x32xf32>, vector<32x128xf32>, vector<4x128xf32> -> vector<4x128xf32>
      %c0_28 = arith.constant 0 : index
      %c0_29 = arith.constant 0 : index
      %39 = vector.load %arg8[%c0_28, %c0_29] : memref<4x1xf32, #tpu.memory_space<vmem>>, vector<4x1xf32>
      %40 = vector.broadcast %39 : vector<4x1xf32> to vector<4x128xf32>
      %41 = arith.addf %38, %40 : vector<4x128xf32>
      %c0_30 = arith.constant 0 : index
      %c0_31 = arith.constant 0 : index
      %42 = vector.load %arg9[%c0_30, %c0_31] : memref<4x128xf32, #tpu.memory_space<vmem>>, vector<4x128xf32>
      tpu.vector_store %arg9[%c0_30, %c0_31], %41 {strides = array<i32>} : memref<4x128xf32, #tpu.memory_space<vmem>>, vector<4x128xf32>,
    } else {
    }
    return
  }
  func.func @transform_0(%arg0: i32) -> (i32, i32) {
    %c0_i32 = arith.constant 0 : i32
    %c0_i32_0 = arith.constant 0 : i32
    return %arg0, %c0_i32 : i32, i32
  }
  func.func @transform_1(%arg0: i32) -> (i32, i32) {
    %c0_i32 = arith.constant 0 : i32
    %c0_i32_0 = arith.constant 0 : i32
    return %c0_i32, %arg0 : i32, i32
  }
  func.func @transform_2(%arg0: i32) -> (i32, i32) {
    %c0_i32 = arith.constant 0 : i32
    %c0_i32_0 = arith.constant 0 : i32
    %c0_i32_1 = arith.constant 0 : i32
    return %c0_i32, %c0_i32_0 : i32, i32
  }
  func.func @transform_3(%arg0: i32) -> (i32, i32) {
    %c0_i32 = arith.constant 0 : i32
    %c0_i32_0 = arith.constant 0 : i32
    %c0_i32_1 = arith.constant 0 : i32
    return %c0_i32, %c0_i32_0 : i32, i32
  }
  func.func @transform_4(%arg0: i32) -> (i32, i32) {
    %c0_i32 = arith.constant 0 : i32
    %c0_i32_0 = arith.constant 0 : i32
    %c0_i32_1 = arith.constant 0 : i32
    return %c0_i32, %c0_i32_0 : i32, i32
  }
  func.func @transform_5(%arg0: i32) -> (i32, i32) {
    %c0_i32 = arith.constant 0 : i32
    %c0_i32_0 = arith.constant 0 : i32
    %c0_i32_1 = arith.constant 0 : i32
    return %c0_i32, %c0_i32_0 : i32, i32
  }
  func.func @transform_6(%arg0: i32) -> (i32, i32) {
    %c0_i32 = arith.constant 0 : i32
    %c0_i32_0 = arith.constant 0 : i32
    %c0_i32_1 = arith.constant 0 : i32
    return %c0_i32, %c0_i32_0 : i32, i32
  }
  func.func @transform_7(%arg0: i32) -> (i32, i32) {
    %c0_i32 = arith.constant 0 : i32
    %c0_i32_0 = arith.constant 0 : i32
    %c0_i32_1 = arith.constant 0 : i32
    return %c0_i32, %c0_i32_0 : i32, i32
  }
  func.func @transform_8(%arg0: i32) -> (i32, i32) {
    %c0_i32 = arith.constant 0 : i32
    %c0_i32_0 = arith.constant 0 : i32
    %c0_i32_1 = arith.constant 0 : i32
    return %c0_i32, %c0_i32_0 : i32, i32
  }
}

</mosaic_0001>

<bundles_post_ra>
// kernel: tpu_custom_call.1
= control target key start
LH: loop header
LB: loop body
LE: loop exit
PB: predicated region body
PF: predicated region fallthrough
CT: control target
= control target key end

     0   :  { %v841_v2 = vmov 0   ;;  %s1026_s0 = inlined_call_operand.vmem [shape: s32[128,1], index: 0, kind: input, shape index: {}]   ;;  %s1027_s1 = inlined_call_operand.vmem [shape: f32[9,128], index: 1, kind: input, shape index: {}]   ;;  %s1028_s2 = inlined_call_operand.vmem [shape: f32[32,9], index: 2, kind: input, shape index: {}]   ;;  %s1029_s3 = inlined_call_operand.vmem [shape: f32[32,1], index: 3, kind: input, shape index: {}]   ;;  %s1030_s4 = inlined_call_operand.vmem [shape: f32[32,32], index: 4, kind: input, shape index: {}]   ;;  %s1031_s5 = inlined_call_operand.vmem [shape: f32[32,1], index: 5, kind: input, shape index: {}]   ;;  %s1032_s6 = inlined_call_operand.vmem [shape: f32[4,32], index: 6, kind: input, shape index: {}]   ;;  %s1033_s7 = inlined_call_operand.vmem [shape: f32[4,1], index: 7, kind: input, shape index: {}]   ;;  %s1034_s8 = inlined_call_operand.hbm [shape: f32[4,128], index: 8, kind: output, shape index: {}]  }
   0x1   :  { %v40_v0 = vld [vmem:[%s1026_s0 + $0x10] sm:$0xff]  ;;  %v38_v1 = vld [vmem:[%s1026_s0] sm:$0xff]  ;;  %814 = vset.pattern.permute.xlu1 %v841_v2  ;;  %813 = vset.pattern.permute.xlu0 %v841_v2  ;;  %v41_v3 = vld [vmem:[%s1026_s0 + $0x18] sm:$0xff] }
   0x2   :  { %61 = vperm.xlu1 %814, %v40_v0   ;;  %55 = vperm.xlu0 %813, %v38_v1   ;;  %v39_v4 = vld [vmem:[%s1026_s0 + $0x8] sm:$0xff]  ;;  %v42_v6 = vld [vmem:[%s1026_s0 + $0x20] sm:$0xff] }
   0x3   :  { %v43_v5 = vld [vmem:[%s1026_s0 + $0x28] sm:$0xff] }
   0x6   :  { %64 = vperm.xlu1 %814, %v41_v3   ;;  %58 = vperm.xlu0 %813, %v39_v4  }
   0x7   :  { %13 = vsyncpa [#allocation4], 0  ;;  %v45_v7 = vld [vmem:[%s1026_s0 + $0x38] sm:$0xff]  ;;  %v44_v8 = vld [vmem:[%s1026_s0 + $0x30] sm:$0xff]  ;;  %v842_v27 = vmov 0.0   ;;  %v36_v28 = vlaneseq  ;;  %s847_s25 = smov [#allocation3]  }
   0x8   :  { %v47_v9 = vld [vmem:[%s1026_s0 + $0x48] sm:$0xff]  ;;  %v46_v10 = vld [vmem:[%s1026_s0 + $0x40] sm:$0xff]  ;;  %v49_v11 = vld [vmem:[%s1026_s0 + $0x58] sm:$0xff]  ;;  %35 = vst [vmem:[#allocation2 + $0x8] sm:$0x1] %v842_v27  ;;  %s597_s26 = sshll.u32 %s847_s25, 4  ;;  %s598_s26 = int_to_ptr.vmem [resolvable:$true] %s597_s26 }
   0x9   :  { %v48_v12 = vld [vmem:[%s1026_s0 + $0x50] sm:$0xff]  ;;  %v51_v13 = vld [vmem:[%s1026_s0 + $0x68] sm:$0xff]  ;;  %v50_v14 = vld [vmem:[%s1026_s0 + $0x60] sm:$0xff]  ;;  %v37_v31 = vand.u32 127, %v36_v28  ;;  %v843_v34 = vmov 1.0|1.0   ;;  %p822_p1 = scmp.lt.s32.totalorder %s598_s26, %s598_s26 }
   0xa   :  { %70 = vperm.xlu1 %814, %v43_v5   ;;  %67 = vperm.xlu0 %813, %v42_v6   ;;  %v53_v15 = vld [vmem:[%s1026_s0 + $0x78] sm:$0xff]  ;;  %v52_v16 = vld [vmem:[%s1026_s0 + $0x70] sm:$0xff]  ;;  %v251_v17 = vld [vmem:[%s1029_s3 + $0x8] sm:$0xff]  ;;  %v240_v53 = vshrl.u32 %v36_v28, 7  ;;  %s817_s27 = scalar_lea.vmem %s598_s26, 64 }
   0xb   :  { %v250_v18 = vld [vmem:[%s1029_s3] sm:$0xff]  ;;  %v253_v19 = vld [vmem:[%s1029_s3 + $0x18] sm:$0xff]  ;;  %v252_v20 = vld [vmem:[%s1029_s3 + $0x10] sm:$0xff]  ;;  %p818_p0 = scmp.ne.s32.totalorder %s598_s26, %s817_s27  ;;  %p823_p2 = scmp.lt.s32.totalorder %s817_s27, %s817_s27 }
   0xc   :  { %v152_v21 = vld [vmem:[%s1027_s1] sm:$0xff]  ;;  %v385_v22 = vld [vmem:[%s1031_s5 + $0x8] sm:$0xff]  ;;  %v387_v24 = vld [vmem:[%s1031_s5 + $0x18] sm:$0xff]  ;;  %v241_v54 = vsub.s32 0, %v240_v53 }
   0xd   :  { %v384_v23 = vld [vmem:[%s1031_s5] sm:$0xff]  ;;  %716 = vmatprep.mubr.f32.mxu0 %v152_v21  ;;  %v386_v25 = vld [vmem:[%s1031_s5 + $0x10] sm:$0xff]  ;;  %v153_v47 = vld [vmem:[%s1027_s1 + $0x8] sm:$0x1]  ;;  %p824_p3 = por %p823_p2, %p822_p1 }
   0xe   :  { %76 = vperm.xlu1 %814, %v45_v7   ;;  %73 = vperm.xlu0 %813, %v44_v8   ;;  %v511_v26 = vld [vmem:[%s1033_s7] sm:$0xf]  ;;  %v247_v62 = vld [vmem:[%s1028_s2 + $0x8] sm:$0xff]  ;;  %v248_v63 = vld [vmem:[%s1028_s2 + $0x10] sm:$0xff] }
   0xf   :  { %v246_v48 = vld [vmem:[%s1028_s2] sm:$0xff]  ;;  %v151_v49 = vld [vmem:[#allocation2 + $0x8] sm:$0x1]  ;;  %v249_v0 = vld [vmem:[%s1028_s2 + $0x18] sm:$0xff]  ;;  %p825_p4 = pnand %p824_p3, %p818_p0 }
  0x10   :  { %v380_v1 = vld [vmem:[%s1030_s4] sm:$0xff]  ;;  %v382_v21 = vld [vmem:[%s1030_s4 + $0x10] sm:$0xff] }
  0x12   :  { %82 = vperm.xlu1 %814, %v47_v9   ;;  %79 = vperm.xlu0 %813, %v46_v10  }
  0x16   :  { %88 = vperm.xlu1 %814, %v49_v11   ;;  %85 = vperm.xlu0 %813, %v48_v12  }
  0x1a   :  { %94 = vperm.xlu1 %814, %v51_v13   ;;  %91 = vperm.xlu0 %813, %v50_v14  }
  0x1e   :  { %100 = vperm.xlu1 %814, %v53_v15   ;;  %97 = vperm.xlu0 %813, %v52_v16  }
  0x22   :  { %261 = vperm.xlu1 %814, %v251_v17   ;;  %256 = vperm.xlu0 %813, %v250_v18  }
  0x26   :  { %271 = vperm.xlu1 %814, %v253_v19   ;;  %266 = vperm.xlu0 %813, %v252_v20   ;;  %v381_v20 = vld [vmem:[%s1030_s4 + $0x8] sm:$0xff] }
  0x2a   :  { %395 = vperm.xlu1 %814, %v385_v22   ;;  %390 = vperm.xlu0 %813, %v384_v23   ;;  %v383_v22 = vld [vmem:[%s1030_s4 + $0x18] sm:$0xff]  ;;  %v845_v23 = vmov 0.0|0.0  }
  0x2e   :  { %405 = vperm.xlu1 %814, %v387_v24   ;;  %400 = vperm.xlu0 %813, %v386_v25  }
  0x32   :  { %514 = vperm.xlu0 %813, %v511_v26  }
  0x81   :  { %v62_v29 = vpop.permute.xlu1 %61  ;;  %v56_v30 = vpop.permute.xlu0 %55 }
  0x82   :  { %vm104_vm1 = vcmp.eq.s32.totalorder %v37_v31, %v62_v29  ;;  %vm102_vm2 = vcmp.eq.s32.totalorder %v37_v31, %v56_v30 }
  0x85   :  { %v65_v32 = vpop.permute.xlu1 %64  ;;  %v59_v33 = vpop.permute.xlu0 %58 }
  0x86   :  { %vm103_vm0 = vcmp.eq.s32.totalorder %v37_v31, %v59_v33  ;;  %vm105_vm3 = vcmp.eq.s32.totalorder %v37_v31, %v65_v32 }
  0x87   :  { %vm754_vm4 = vmpackc.low %vm103_vm0, %vm102_vm2 }
  0x88   :  { %755 = vmatprep.subr.msk.bf16.mxu0 %vm754_vm4, %v843_v34  ;;  %vm758_vm5 = vmpackc.low %vm105_vm3, %vm104_vm1 }
  0x89   :  { %v71_v35 = vpop.permute.xlu1 %70  ;;  %v68_v36 = vpop.permute.xlu0 %67  ;;  %757 = vmatpush3.bf16.msk.msra.mxu0 %vm754_vm4, %v843_v34 }
  0x8a   :  { %vm107_vm6 = vcmp.eq.s32.totalorder %v37_v31, %v71_v35  ;;  %vm106_vm7 = vcmp.eq.s32.totalorder %v37_v31, %v68_v36  ;;  %759 = vmatprep.subr.msk.bf16.mxu0 %vm758_vm5, %v843_v34 }
  0x8b   :  { %vm762_vm8 = vmpackc.low %vm107_vm6, %vm106_vm7 }
  0x8d   :  { %v77_v37 = vpop.permute.xlu1 %76  ;;  %v74_v38 = vpop.permute.xlu0 %73  ;;  %761 = vmatpush3.bf16.msk.msra.mxu0 %vm758_vm5, %v843_v34 }
  0x8e   :  { %vm109_vm9 = vcmp.eq.s32.totalorder %v37_v31, %v77_v37  ;;  %vm108_vm10 = vcmp.eq.s32.totalorder %v37_v31, %v74_v38  ;;  %763 = vmatprep.subr.msk.bf16.mxu0 %vm762_vm8, %v843_v34 }
  0x8f   :  { %vm766_vm11 = vmpackc.low %vm109_vm9, %vm108_vm10  ;;  %vm287_vm9 = vcmask 1040384   ;;  %vm844_vm10 = vmmov 1  }
  0x91   :  { %v83_v39 = vpop.permute.xlu1 %82  ;;  %v80_v40 = vpop.permute.xlu0 %79  ;;  %765 = vmatpush3.bf16.msk.msra.mxu0 %vm762_vm8, %v843_v34  ;;  %vm274_vm8 = vcmask 72704  }
  0x92   :  { %vm111_vm12 = vcmp.eq.s32.totalorder %v37_v31, %v83_v39  ;;  %vm110_vm13 = vcmp.eq.s32.totalorder %v37_v31, %v80_v40  ;;  %767 = vmatprep.subr.msk.bf16.mxu0 %vm766_vm11, %v843_v34  ;;  %723 = vmatprep.mubr.msk.f32.mxu1 %vm274_vm8, %v246_v48 }
  0x93   :  { %vm770_vm14 = vmpackc.low %vm111_vm12, %vm110_vm13  ;;  %vm408_vm12 = vcmask 261120   ;;  %vm846_vm13 = vmmov 0  }
  0x95   :  { %v89_v41 = vpop.permute.xlu1 %88  ;;  %v86_v42 = vpop.permute.xlu0 %85  ;;  %769 = vmatpush3.bf16.msk.msra.mxu0 %vm766_vm11, %v843_v34  ;;  %vm787_vm11 = vmpackc.low %vm287_vm9, %vm844_vm10 }
  0x96   :  { %vm113_vm15 = vcmp.eq.s32.totalorder %v37_v31, %v89_v41  ;;  %vm112_vm0 = vcmp.eq.s32.totalorder %v37_v31, %v86_v42  ;;  %771 = vmatprep.subr.msk.bf16.mxu0 %vm770_vm14, %v843_v34  ;;  %v510_v42 = vld [vmem:[%s1032_s6] sm:$0xf] }
  0x97   :  { %vm774_vm1 = vmpackc.low %vm113_vm15, %vm112_vm0 }
  0x99   :  { %v95_v43 = vpop.permute.xlu1 %94  ;;  %v92_v44 = vpop.permute.xlu0 %91  ;;  %773 = vmatpush3.bf16.msk.msra.mxu0 %vm770_vm14, %v843_v34 }
  0x9a   :  { %vm115_vm2 = vcmp.eq.s32.totalorder %v37_v31, %v95_v43  ;;  %vm114_vm3 = vcmp.eq.s32.totalorder %v37_v31, %v92_v44  ;;  %775 = vmatprep.subr.msk.bf16.mxu0 %vm774_vm1, %v843_v34 }
  0x9b   :  { %vm778_vm4 = vmpackc.low %vm115_vm2, %vm114_vm3 }
  0x9d   :  { %v101_v45 = vpop.permute.xlu1 %100  ;;  %v98_v46 = vpop.permute.xlu0 %97  ;;  %777 = vmatpush3.bf16.msk.msra.mxu0 %vm774_vm1, %v843_v34 }
  0x9e   :  { %vm117_vm5 = vcmp.eq.s32.totalorder %v37_v31, %v101_v45  ;;  %vm116_vm6 = vcmp.eq.s32.totalorder %v37_v31, %v98_v46  ;;  %779 = vmatprep.subr.msk.bf16.mxu0 %vm778_vm4, %v843_v34 }
  0x9f   :  { %vm782_vm7 = vmpackc.low %vm117_vm5, %vm116_vm6 }
  0xa1   :  { %781 = vmatpush3.bf16.msk.msra.mxu0 %vm778_vm4, %v843_v34  ;;  %v262_v2 = vpop.permute.xlu1 %261  ;;  %v257_v3 = vpop.permute.xlu0 %256 }
  0xa2   :  { %783 = vmatprep.subr.msk.bf16.mxu0 %vm782_vm7, %v843_v34 }
  0xa5   :  { %785 = vmatpush3.bf16.msk.msra.mxu0 %vm782_vm7, %v843_v34  ;;  %v272_v9 = vpop.permute.xlu1 %271  ;;  %v267_v12 = vpop.permute.xlu0 %266 }
  0xa8   :  { %717 = vmatmul.mubr.f32.vlgmr.msra.gmra.mrb[0].mxu0 %v153_v47 }
  0xa9   :  { %v396_v24 = vpop.permute.xlu1 %395  ;;  %v391_v25 = vpop.permute.xlu0 %390 }
  0xad   :  { %v406_v32 = vpop.permute.xlu1 %405  ;;  %v401_v35 = vpop.permute.xlu0 %400 }
  0xb1   :  { %v515_v43 = vpop.permute.xlu0 %514 }
 0x17b   :  { %v718_v50 = vpop.f32.mrb[0].mxu0 }
 0x17c   :  { %v230_v51 = vadd.f32 %v718_v50, %v151_v49  ;;  %v220_v52 = vpop.f32.mrb[1].mxu0 }
 0x17e   :  { %232 = vst [vmem:[#allocation2 + $0x8] sm:$0x1] %v230_v51 }
 0x185   :  { %v237_v55 = vld [vmem:[#allocation2 + $0x8] sm:$0x1] }
 0x186   :  { %v238_v56 = vmax.f32 %v237_v55, 1.0 }
 0x188   :  { %v242_v57 = vrot.slane %v238_v56, %v241_v54 }
 0x18a   :  { %815 = vrcp.f32 %v242_v57 }
 0x194   :  { %v816_v58 = vpop.eup %815 }
 0x195   :  { %v244_v59 = vmul.f32 %v816_v58, %v220_v52  ;;  %v245_v60 = vmul.f32 %v816_v58, %v237_v55 }
 0x197   :  { %v786_v61 = vpack.c.bf16 %v245_v60, %v244_v59 }
 0x199   :  { %788 = vmatprep.subr.msk.bf16.mxu1 %vm787_vm11, %v786_v61 }
 0x19a   :  { %791 = vmatpush3.bf16.msk.msra.mxu1 %vm787_vm11, %v786_v61 }
 0x19d   :  { %724 = vmatmul.mubr.msk.f32.vlgmr.msra.gmra.mrb[0].mxu1 %vm274_vm8, %v247_v62 }
 0x19e   :  { %726 = vmatprep.mubr.msk.f32.mxu1 %vm274_vm8, %v248_v63 }
 0x1a1   :  { %727 = vmatmul.mubr.msk.f32.gmra.mrb[2].mxu1 %vm274_vm8, %v249_v0 }
 0x1a2   :  { %737 = vmatprep.mubr.msk.f32.mxu1 %vm408_vm12, %v380_v1 }
 0x270   :  { %v725_v4 = vpop.f32.mrb[0].mxu1 }
 0x271   :  { %v363_v5 = vadd.f32 %v725_v4, %v262_v2  ;;  %v357_v6 = vpop.f32.mrb[1].mxu1 }
 0x272   :  { %v358_v7 = vadd.f32 %v357_v6, %v257_v3 }
 0x273   :  { %v377_v8 = vmax.f32 %v363_v5, 0.0 }
 0x274   :  { %v376_v10 = vmax.f32 %v358_v7, 0.0  ;;  %v728_v11 = vpop.f32.mrb[2].mxu1 }
 0x275   :  { %v373_v13 = vadd.f32 %v728_v11, %v272_v9  ;;  %v367_v14 = vpop.f32.mrb[3].mxu1 }
 0x276   :  { %v792_v15 = vpack.c.bf16 %v377_v8, %v376_v10  ;;  %v368_v16 = vadd.f32 %v367_v14, %v267_v12 }
 0x277   :  { %v379_v17 = vmax.f32 %v373_v13, 0.0 }
 0x278   :  { %v378_v18 = vmax.f32 %v368_v16, 0.0  ;;  %793 = vmatprep.subr.bf16.mxu1 %v792_v15 }
 0x279   :  { %795 = vmatpush3.bf16.msra.mxu1 %v792_v15 }
 0x27a   :  { %v796_v19 = vpack.c.bf16 %v379_v17, %v378_v18 }
 0x27c   :  { %797 = vmatprep.subr.bf16.mxu1 %v796_v19 }
 0x27d   :  { %799 = vmatpush3.bf16.msra.mxu1 %v796_v19 }
 0x27e   :  { %800 = vmatprep.subr.bf16.mxu1 %v845_v23 }
 0x280   :  { %738 = vmatmul.mubr.msk.f32.vlgmr.msra.gmra.mrb[4].mxu1 %vm408_vm12, %v381_v20 }
 0x281   :  { %740 = vmatprep.mubr.msk.f32.mxu1 %vm408_vm12, %v382_v21 }
 0x284   :  { %741 = vmatmul.mubr.msk.f32.gmra.mrb[6].mxu1 %vm408_vm12, %v383_v22 }
 0x285   :  { %751 = vmatprep.mubr.msk.f32.mxu1 %vm846_vm13, %v842_v27 }
 0x353   :  { %v739_v26 = vpop.f32.mrb[4].mxu1 }
 0x354   :  { %v493_v28 = vadd.f32 %v739_v26, %v396_v24  ;;  %v487_v29 = vpop.f32.mrb[5].mxu1 }
 0x355   :  { %v488_v30 = vadd.f32 %v487_v29, %v391_v25 }
 0x356   :  { %v507_v31 = vmax.f32 %v493_v28, 0.0 }
 0x357   :  { %v506_v33 = vmax.f32 %v488_v30, 0.0  ;;  %v742_v34 = vpop.f32.mrb[6].mxu1 }
 0x358   :  { %v503_v36 = vadd.f32 %v742_v34, %v406_v32  ;;  %v497_v37 = vpop.f32.mrb[7].mxu1 }
 0x359   :  { %v801_v38 = vpack.c.bf16 %v507_v31, %v506_v33  ;;  %v498_v39 = vadd.f32 %v497_v37, %v401_v35 }
 0x35a   :  { %v509_v40 = vmax.f32 %v503_v36, 0.0 }
 0x35b   :  { %v508_v41 = vmax.f32 %v498_v39, 0.0  ;;  %802 = vmatpush3.bf16.msra.mxu1 %v801_v38 }
 0x35c   :  { %803 = vmatprep.subr.bf16.mxu1 %v845_v23 }
 0x35d   :  { %v804_v27 = vpack.c.bf16 %v509_v40, %v508_v41 }
 0x35f   :  { %805 = vmatpush3.bf16.msra.mxu1 %v804_v27 }
 0x362   :  { %752 = vmatmul.mubr.msk.f32.vlgmr.msra.gmra.mrb[8].mxu1 %vm408_vm12, %v510_v42 }
 0x435   :  { %v586_v44 = vpop.f32.mrb[8].mxu1 }
 0x436   :  { %v587_v45 = vadd.f32 %v586_v44, %v515_v43  ;;  %v753_v46 = vpop.f32.mrb[9].mxu1 }
 0x438   :  { %590 = vst [vmem:[#allocation3] sm:$0xf] %v587_v45 }
 0x439   :  { %828 = shalt.err (!%p825_p4)
}
 0x43a   :  { %s829_s6 = scalar_lea.hbm %s1034_s8, 64 }
 0x43b   :  { %p830_p5 = scmp.ne.s32.totalorder %s1034_s8, %s829_s6  ;;  %p833_p6 = scmp.lt.u32.totalorder %s829_s6, %s1034_s8 }
 0x43d   :  { %p835_p7 = pnand %p833_p6, %p830_p5 }
 0x43f   :  { %838 = shalt.err (!%p835_p7)
}
 0x440   :  { %600 = dma.vmem_to_hbm [thread:$0]  %s598_s26, 64, %s1034_s8, [#allocation4]  }
 0x441   :  { %839 = dma.done.wait [#allocation4], 64  }
 0x442   :  { %840 = vsyncadd [#allocation4], 4294967232 }
 0x443   :  { %604 = vsyncpa [#allocation4], 1 }

</bundles_post_ra>
